<compile_context>
chip_gen: v6e
topology: v6e:2x2x1
jax: 0.10.0
libtpu: 0.0.40
codegen_flags: <defaults>
</compile_context>

<pallas_src>
import jax
import jax.numpy as jnp
from jax.experimental import pallas as pl
from jax.experimental.pallas import tpu as pltpu


def _round_up(v, m):
    return -(-v // m) * m


# --------------------------------------------------------------------------- #
# Kernel body
# --------------------------------------------------------------------------- #
def _attend(x_blk, w1, b1, w2_row, mask, valid_s, approx_recip):
    """
    x_blk:   (TB, Sp, D)  bf16 or f32 -- fed to the MXU in its HBM dtype
    w1:      (D, H)       same dtype as x_blk (MXU operand)
    b1:      (1, H)       float32
    w2_row:  (1, H)       float32
    mask:    (TB, Sp)     float32 (lane-dense) or None
    valid_s: static int   number of real (unpadded) candidate rows
    returns  (TB, D)      float32 pooled vectors
    """
    TB, Sp, D = x_blk.shape
    H = w1.shape[-1]

    # --- W1 projection: one big MXU dot over all TB*Sp rows (bf16 operands OK;
    #     f32 accumulation).  Reshape is a free view because Sp is tile-aligned.
    x2 = x_blk.reshape(TB * Sp, D)
    e = jnp.tanh(
        jnp.dot(x2, w1, preferred_element_type=jnp.float32) + b1
    )  # (TB*Sp, H) f32

    # --- H->1 projection on VPU/XLU; result is lane-dense: (TB, Sp), Sp on lanes.
    score = jnp.sum(e.reshape(TB, Sp, H) * w2_row, axis=-1)  # (TB, Sp)

    # --- numerically-stable exp + masking + normalization, all lane-dense.
    score = score - jnp.max(score, axis=-1, keepdims=True)
    alpha = jnp.exp(score)  # EUP over ~ceil(TB/8)*ceil(Sp/128) vregs
    if mask is not None:
        alpha = alpha * mask
    elif valid_s < Sp:
        # Static S padding with no shipped mask: kill the padded candidate rows.
        pos = jax.lax.broadcasted_iota(jnp.int32, (TB, Sp), 1)
        alpha = jnp.where(pos < valid_s, alpha, 0.0)
    denom = jnp.sum(alpha, axis=-1, keepdims=True)            # (TB, 1)
    inv = pl.reciprocal(denom + 1e-08, approx=approx_recip)   # one recip per row
    alpha = alpha * inv

    # --- single small relayout (lanes -> sublanes), then VPU pooling.
    alpha3 = alpha[:, :, None]                                # (TB, Sp, 1)
    # x is upcast only here, fused into the multiply (no standalone f32 copy).
    pooled = jnp.sum(x_blk.astype(jnp.float32) * alpha3, axis=1)  # (TB, D)
    return pooled


def _make_kernel(has_mask, valid_s, approx_recip):
    if has_mask:
        def kernel(x_ref, w1_ref, b1_ref, w2_ref, mask_ref, o_ref):
            pooled = _attend(x_ref[...], w1_ref[...], b1_ref[...], w2_ref[...],
                             mask_ref[...], valid_s, approx_recip)
            o_ref[...] = pooled.astype(o_ref.dtype)
    else:
        def kernel(x_ref, w1_ref, b1_ref, w2_ref, o_ref):
            pooled = _attend(x_ref[...], w1_ref[...], b1_ref[...], w2_ref[...],
                             None, valid_s, approx_recip)
            o_ref[...] = pooled.astype(o_ref.dtype)
    return kernel


# --------------------------------------------------------------------------- #
# Tiling / VMEM sizing
# --------------------------------------------------------------------------- #
def _vmem_config():
    """Generation-aware (budget for the x block, vmem_limit_bytes)."""
    kind = ""
    try:
        kind = jax.devices()[0].device_kind.lower()
    except Exception:
        pass
    if "v5" in kind:
        budget = 13 * 1024 * 1024       # v5e: default scoped VMEM is 16 MiB
    else:
        budget = 24 * 1024 * 1024       # v6e / v7x (v7x: 64 MiB physical per TC)
    vmem_limit = budget + 16 * 1024 * 1024   # headroom for weights/temps; <= 64 MiB
    return budget, vmem_limit


def _choose_tb(B, Sp, D, H, x_itemsize, ships_mask, budget):
    lane_h = _round_up(max(H, 1), 128)
    per_row = 2 * Sp * D * x_itemsize        # x block, double-buffered DMA (dominant)
    per_row += 2 * D * 4                      # pooled output row, double-buffered
    per_row += Sp * lane_h * 4                # e = tanh(xW1+b1): H lane-padded
    per_row += Sp * 512                       # alpha relayout (Sp on sublanes) + temps
    if ships_mask:
        per_row += 2 * Sp * 4                 # lane-dense (tb, Sp) mask block
    tb = budget // max(per_row, 1)
    tb = max(8, (tb // 8) * 8)                # sublane-aligned, no artificial upper cap
    tb = min(tb, _round_up(B, 8))             # don't pad far past what B needs
    return tb


# --------------------------------------------------------------------------- #
# Public wrapper
# --------------------------------------------------------------------------- #
def additive_attention(x, w1, b1, w2, b2=None, attn_mask=None, *, x_dtype=None, tb=None):
    """
    Pallas TPU forward for AdditiveAttention.

    Args:
        x:  (B, S, D)               batch, candidate_size, candidate_vector_dim
        w1: (H, D), b1: (H,)        att_fc1 weight/bias (PyTorch nn.Linear layout)
        w2: (1, H), b2: (1,)        att_fc2 weight/bias (b2 cancels under the
                                    exp/normalization; accepted for API parity)
        attn_mask: optional (B, S)
        x_dtype: HBM/MXU dtype for x (default bfloat16; float32 is opt-in)
        tb: batch rows per grid step (multiple of 8); auto-chosen if None
    Returns:
        (B, D) float32
    """
    B, S, D = x.shape
    H = w1.shape[0]

    # Default to bf16 shipping: the op is memory-bound on every generation.
    x_dtype = jnp.dtype(jnp.bfloat16) if x_dtype is None else jnp.dtype(x_dtype)
    if x_dtype not in (jnp.dtype(jnp.float32), jnp.dtype(jnp.bfloat16)):
        x_dtype = jnp.dtype(jnp.bfloat16)

    # Pad S to the sublane tile so the in-kernel reshapes are free views.
    s_mult = 16 if x_dtype == jnp.dtype(jnp.bfloat16) else 8
    Sp = _round_up(S, s_mult)

    budget, vmem_limit = _vmem_config()
    ships_mask = attn_mask is not None
    if tb is None:
        tb = _choose_tb(B, Sp, D, H, x_dtype.itemsize, ships_mask, budget)
        if B > 8:
            # Keep >= 2 grid steps so the "parallel" axis can shard across the
            # two TensorCores on v7x (negligible extra cost on v5e/v6e).
            tb = min(tb, _round_up(-(-B // 2), 8))
    tb = max(8, (int(tb) // 8) * 8)
    Bp = _round_up(B, tb)

    xk = jnp.asarray(x, x_dtype)
    if Bp != B or Sp != S:
        xk = jnp.pad(xk, ((0, Bp - B), (0, Sp - S), (0, 0)))

    # Weights in kernel-friendly orientation; constant index_maps keep them
    # resident in VMEM across grid steps.  W1 travels in x's dtype so the MXU
    # runs its native bf16 path; b1/w2 stay f32 (all post-dot math is f32).
    # NOTE: the three weight specs could also use pipeline_mode=pl.Buffered(1)
    # to drop their second pipeline buffer (tiny VMEM saving, mostly v7x).
    w1_t = jnp.asarray(w1, jnp.float32).T.reshape(D, H).astype(x_dtype)  # (D, H)
    b1_r = jnp.asarray(b1, jnp.float32).reshape(1, H)                    # (1, H)
    w2_r = jnp.asarray(w2, jnp.float32).reshape(1, H)                    # (1, H)
    # b2 intentionally unused: it cancels under the exp/normalization.

    grid = (Bp // tb,)
    in_specs = [
        pl.BlockSpec((tb, Sp, D), lambda i: (i, 0, 0)),    # x block
        pl.BlockSpec((D, H), lambda i: (0, 0)),            # W1^T (resident)
        pl.BlockSpec((1, H), lambda i: (0, 0)),            # b1   (resident)
        pl.BlockSpec((1, H), lambda i: (0, 0)),            # w2   (resident)
    ]
    args = [xk, w1_t, b1_r, w2_r]

    approx_recip = (x_dtype == jnp.dtype(jnp.bfloat16))
    if ships_mask:
        m = jnp.asarray(attn_mask, jnp.float32).reshape(B, S)
        if Bp != B or Sp != S:
            m = jnp.pad(m, ((0, Bp - B), (0, Sp - S)))     # pads get weight 0
        in_specs.append(pl.BlockSpec((tb, Sp), lambda i: (i, 0)))  # lane-dense mask
        args.append(m)
        kernel = _make_kernel(True, Sp, approx_recip)
    else:
        # No mask DMA at all; padded candidate rows killed by static iota mask.
        kernel = _make_kernel(False, S, approx_recip)

    out = pl.pallas_call(
        kernel,
        out_shape=jax.ShapeDtypeStruct((Bp, D), jnp.float32),
        grid_spec=pltpu.PrefetchScalarGridSpec(
            num_scalar_prefetch=0,
            grid=grid,
            in_specs=in_specs,
            out_specs=pl.BlockSpec((tb, D), lambda i: (i, 0)),
        ),
        compiler_params=pltpu.CompilerParams(
            dimension_semantics=("parallel",),
            vmem_limit_bytes=int(vmem_limit),
        ),
    )(*args)
    return out[:B] if Bp != B else out


# --------------------------------------------------------------------------- #
# Pure-JAX reference (mirrors the PyTorch forward exactly, including b2)
# --------------------------------------------------------------------------- #
def _reference(x, w1, b1, w2, b2, attn_mask=None):
    e = jnp.tanh(jnp.einsum("bsd,hd->bsh", x, w1) + b1)
    alpha = jnp.exp(jnp.einsum("bsh,oh->bso", e, w2) + b2)            # (B, S, 1)
    if attn_mask is not None:
        alpha = alpha * attn_mask[:, :, None]
    alpha = alpha / (jnp.sum(alpha, axis=1, keepdims=True) + 1e-08)
    pooled = jnp.einsum("bds,bso->bdo", jnp.transpose(x, (0, 2, 1)), alpha)
    return pooled.reshape(x.shape[0], -1)


if __name__ == "__main__":
    B, S, D, H = 2, 8, 32, 5

    key = jax.random.PRNGKey(0)
    kx, kw1, kb1, kw2, kb2, km, kx2, km2 = jax.random.split(key, 8)

    x = jax.random.normal(kx, (B, S, D), jnp.float32)
    w1 = jax.random.normal(kw1, (H, D), jnp.float32) * 0.1
    b1 = jax.random.normal(kb1, (H,), jnp.float32) * 0.1
    w2 = jax.random.normal(kw2, (1, H), jnp.float32) * 0.1
    b2 = jax.random.normal(kb2, (1,), jnp.float32) * 0.1
    attn_mask = (jax.random.uniform(km, (B, S)) > 0.2).astype(jnp.float32)

    ref = _reference(x, w1, b1, w2, b2, attn_mask)
    ref_nm = _reference(x, w1, b1, w2, b2, None)

    # 1) Default bf16 shipping, masked (also exercises the S->16 pad path).
    out = jax.block_until_ready(additive_attention(x, w1, b1, w2, b2, attn_mask))
    assert out.shape == (B, D)
    assert jnp.allclose(out, ref, atol=5e-2, rtol=0.0), "bf16 masked mismatch"

    # 2) f32 opt-in, masked -> tight tolerance (exact reciprocal path).
    out_f32 = jax.block_until_ready(
        additive_attention(x, w1, b1, w2, b2, attn_mask, x_dtype=jnp.float32))
    assert jnp.allclose(out_f32, ref, atol=1e-5, rtol=1e-5), "f32 masked mismatch"

    # 3) No-mask, default bf16 (S padded to 16 -> static in-kernel iota mask, no mask DMA).
    out_nm = jax.block_until_ready(additive_attention(x, w1, b1, w2, b2, None))
    assert jnp.allclose(out_nm, ref_nm, atol=5e-2, rtol=0.0), "bf16 no-mask mismatch"

    # 4) No-mask, f32 (S already a multiple of 8 -> no padding, no mask at all).
    out_nm32 = jax.block_until_ready(
        additive_attention(x, w1, b1, w2, b2, None, x_dtype=jnp.float32))
    assert jnp.allclose(out_nm32, ref_nm, atol=1e-5, rtol=1e-5), "f32 no-mask mismatch"

    # 5) Ragged batch + explicit tb -> multi-step grid + batch padding path.
    B2 = 13
    x2 = jax.random.normal(kx2, (B2, S, D), jnp.float32)
    mask2 = (jax.random.uniform(km2, (B2, S)) > 0.2).astype(jnp.float32)
    out2 = jax.block_until_ready(
        additive_attention(x2, w1, b1, w2, b2, mask2, x_dtype=jnp.float32, tb=8))
    ref2 = _reference(x2, w1, b1, w2, b2, mask2)
    assert out2.shape == (B2, D)
    assert jnp.allclose(out2, ref2, atol=1e-5, rtol=1e-5), "padded-batch mismatch"

    print("KERNEL_OK")
</pallas_src>

<mosaic_0001>
module attributes {stable_mosaic.version = 11 : i64} {
  func.func @kernel(%arg0: i32, %arg1: memref<8x16x32xbf16, #tpu.memory_space<vmem>>, %arg2: memref<32x5xbf16, #tpu.memory_space<vmem>>, %arg3: memref<1x5xf32, #tpu.memory_space<vmem>>, %arg4: memref<1x5xf32, #tpu.memory_space<vmem>>, %arg5: memref<8x16xf32, #tpu.memory_space<vmem>>, %arg6: memref<8x32xf32, #tpu.memory_space<vmem>>) attributes {dimension_semantics = [#tpu.dimension_semantics<parallel>], iteration_bounds = array<i64: 1>, scalar_prefetch = 0 : i64, scratch_operands = 0 : i64, tpu.core_type = #tpu.core_type<tc>, window_params = [{transform_indices = @transform_0, window_bounds = array<i64: 8, 16, 32>}, {pipeline_mode = #tpu.pipeline_mode<synchronous>, transform_indices = @transform_1, window_bounds = array<i64: 32, 5>}, {pipeline_mode = #tpu.pipeline_mode<synchronous>, transform_indices = @transform_2, window_bounds = array<i64: 1, 5>}, {pipeline_mode = #tpu.pipeline_mode<synchronous>, transform_indices = @transform_3, window_bounds = array<i64: 1, 5>}, {transform_indices = @transform_4, window_bounds = array<i64: 8, 16>}, {transform_indices = @transform_5, window_bounds = array<i64: 8, 32>}]} {
    %c0 = arith.constant 0 : index
    %c0_0 = arith.constant 0 : index
    %c0_1 = arith.constant 0 : index
    %0 = vector.load %arg1[%c0, %c0_0, %c0_1] : memref<8x16x32xbf16, #tpu.memory_space<vmem>>, vector<8x16x32xbf16>
    %c0_2 = arith.constant 0 : index
    %c0_3 = arith.constant 0 : index
    %1 = vector.load %arg2[%c0_2, %c0_3] : memref<32x5xbf16, #tpu.memory_space<vmem>>, vector<32x5xbf16>
    %c0_4 = arith.constant 0 : index
    %c0_5 = arith.constant 0 : index
    %2 = vector.load %arg3[%c0_4, %c0_5] : memref<1x5xf32, #tpu.memory_space<vmem>>, vector<1x5xf32>
    %c0_6 = arith.constant 0 : index
    %c0_7 = arith.constant 0 : index
    %3 = vector.load %arg4[%c0_6, %c0_7] : memref<1x5xf32, #tpu.memory_space<vmem>>, vector<1x5xf32>
    %c0_8 = arith.constant 0 : index
    %c0_9 = arith.constant 0 : index
    %4 = vector.load %arg5[%c0_8, %c0_9] : memref<8x16xf32, #tpu.memory_space<vmem>>, vector<8x16xf32>
    %5 = vector.shape_cast %0 : vector<8x16x32xbf16> to vector<128x32xbf16>
    %cst = arith.constant dense<0.000000e+00> : vector<128x5xf32>
    %6 = tpu.matmul %5, %1, %cst {dimension_numbers = #tpu.dot_dimension_numbers<[1], [0], [0], [1], [0, 0, 1, 1], [], []>} : vector<128x32xbf16>, vector<32x5xbf16>, vector<128x5xf32> -> vector<128x5xf32>
    %7 = vector.broadcast %2 : vector<1x5xf32> to vector<128x5xf32>
    %8 = arith.addf %6, %7 : vector<128x5xf32>
    %9 = math.tanh %8 : vector<128x5xf32>
    %10 = vector.shape_cast %9 : vector<128x5xf32> to vector<8x16x5xf32>
    %11 = vector.shape_cast %3 : vector<1x5xf32> to vector<1x1x5xf32>
    %12 = vector.broadcast %11 : vector<1x1x5xf32> to vector<8x16x5xf32>
    %13 = arith.mulf %10, %12 : vector<8x16x5xf32>
    %cst_10 = arith.constant dense<0.000000e+00> : vector<8x16xf32>
    %14 = vector.multi_reduction <add>, %13, %cst_10 [2] : vector<8x16x5xf32> to vector<8x16xf32>
    %cst_11 = arith.constant dense<0xFF800000> : vector<8xf32>
    %15 = vector.multi_reduction <maximumf>, %14, %cst_11 [1] : vector<8x16xf32> to vector<8xf32>
    %16 = vector.shape_cast %15 : vector<8xf32> to vector<8x1xf32>
    %17 = vector.broadcast %16 : vector<8x1xf32> to vector<8x16xf32>
    %18 = arith.subf %14, %17 : vector<8x16xf32>
    %19 = math.exp %18 : vector<8x16xf32>
    %20 = arith.mulf %19, %4 : vector<8x16xf32>
    %cst_12 = arith.constant dense<0.000000e+00> : vector<8xf32>
    %21 = vector.multi_reduction <add>, %20, %cst_12 [1] : vector<8x16xf32> to vector<8xf32>
    %22 = vector.shape_cast %21 : vector<8xf32> to vector<8x1xf32>
    %cst_13 = arith.constant 9.99999993E-9 : f32
    %23 = vector.broadcast %cst_13 : f32 to vector<8x1xf32>
    %24 = arith.addf %22, %23 : vector<8x1xf32>
    %25 = tpu.reciprocal %24 {approx = true} : vector<8x1xf32> -> vector<8x1xf32>
    %26 = vector.broadcast %25 : vector<8x1xf32> to vector<8x16xf32>
    %27 = arith.mulf %20, %26 : vector<8x16xf32>
    %28 = vector.shape_cast %27 : vector<8x16xf32> to vector<8x16x1xf32>
    %29 = arith.extf %0 : vector<8x16x32xbf16> to vector<8x16x32xf32>
    %30 = vector.broadcast %28 : vector<8x16x1xf32> to vector<8x16x32xf32>
    %31 = arith.mulf %29, %30 : vector<8x16x32xf32>
    %cst_14 = arith.constant dense<0.000000e+00> : vector<8x32xf32>
    %32 = vector.multi_reduction <add>, %31, %cst_14 [1] : vector<8x16x32xf32> to vector<8x32xf32>
    %c0_15 = arith.constant 0 : index
    %c0_16 = arith.constant 0 : index
    %33 = vector.load %arg6[%c0_15, %c0_16] : memref<8x32xf32, #tpu.memory_space<vmem>>, vector<8x32xf32>
    tpu.vector_store %arg6[%c0_15, %c0_16], %32 {strides = array<i32>} : memref<8x32xf32, #tpu.memory_space<vmem>>, vector<8x32xf32>,
    return
  }
  func.func @transform_0(%arg0: i32) -> (i32, i32, i32) {
    %c0_i32 = arith.constant 0 : i32
    %c0_i32_0 = arith.constant 0 : i32
    %c0_i32_1 = arith.constant 0 : i32
    return %arg0, %c0_i32, %c0_i32_0 : i32, i32, i32
  }
  func.func @transform_1(%arg0: i32) -> (i32, i32) {
    %c0_i32 = arith.constant 0 : i32
    %c0_i32_0 = arith.constant 0 : i32
    %c0_i32_1 = arith.constant 0 : i32
    return %c0_i32, %c0_i32_0 : i32, i32
  }
  func.func @transform_2(%arg0: i32) -> (i32, i32) {
    %c0_i32 = arith.constant 0 : i32
    %c0_i32_0 = arith.constant 0 : i32
    %c0_i32_1 = arith.constant 0 : i32
    return %c0_i32, %c0_i32_0 : i32, i32
  }
  func.func @transform_3(%arg0: i32) -> (i32, i32) {
    %c0_i32 = arith.constant 0 : i32
    %c0_i32_0 = arith.constant 0 : i32
    %c0_i32_1 = arith.constant 0 : i32
    return %c0_i32, %c0_i32_0 : i32, i32
  }
  func.func @transform_4(%arg0: i32) -> (i32, i32) {
    %c0_i32 = arith.constant 0 : i32
    %c0_i32_0 = arith.constant 0 : i32
    return %arg0, %c0_i32 : i32, i32
  }
  func.func @transform_5(%arg0: i32) -> (i32, i32) {
    %c0_i32 = arith.constant 0 : i32
    %c0_i32_0 = arith.constant 0 : i32
    return %arg0, %c0_i32 : i32, i32
  }
}

</mosaic_0001>

<bundles_post_ra>
// kernel: tpu_custom_call.1
= control target key start
LH: loop header
LB: loop body
LE: loop exit
PB: predicated region body
PF: predicated region fallthrough
CT: control target
= control target key end

     0   :  { %10 = vsyncpa [#allocation3], 0  ;;  %s1691_s0 = inlined_call_operand.hbm [shape: bf16[8,16,32], index: 0, kind: input, shape index: {}]   ;;  %s1692_s1 = inlined_call_operand.vmem [shape: bf16[32,5], index: 1, kind: input, shape index: {}]   ;;  %s1693_s2 = inlined_call_operand.vmem [shape: f32[1,5], index: 2, kind: input, shape index: {}]   ;;  %s1694_s3 = inlined_call_operand.vmem [shape: f32[1,5], index: 3, kind: input, shape index: {}]   ;;  %s1695_s4 = inlined_call_operand.vmem [shape: f32[8,16], index: 4, kind: input, shape index: {}]   ;;  %s1696_s5 = inlined_call_operand.hbm [shape: f32[8,32], index: 5, kind: output, shape index: {}]  }
   0x1   :  { %11 = vsyncpa [#allocation4], 0  ;;  %s1258_s18 = smov [#allocation2]  }
   0x2   :  { %s17_s19 = sshll.u32 %s1258_s18, 4  ;;  %s18_s19 = int_to_ptr.vmem [resolvable:$true] %s17_s19 }
   0x3   :  { %s1222_s20 = scalar_lea.vmem %s18_s19, 1024  ;;  %p1227_p1 = scmp.lt.s32.totalorder %s18_s19, %s18_s19 }
   0x4   :  { %p1223_p0 = scmp.ne.s32.totalorder %s18_s19, %s1222_s20  ;;  %p1228_p2 = scmp.lt.s32.totalorder %s1222_s20, %s1222_s20 }
   0x6   :  { %p1229_p3 = por %p1228_p2, %p1227_p1 }
   0x8   :  { %p1230_p4 = pnand %p1229_p3, %p1223_p0 }
   0xa   :  { %1233 = shalt.err (!%p1230_p4)
}
   0xb   :  { %s1259_s21 = smov 64   ;;  %s1260_s22 = smov 4  }
   0xc   :  { %23 = dma.hbm_to_vmem [thread:$0]  %s1691_s0, 1024, %s18_s19, [#allocation3], %s1259_s21, %s1259_s21, %s1260_s22  }
   0xd   :  { %1254 = dma.done.wait [#allocation3], 1024  }
   0xe   :  { %1255 = vsyncadd [#allocation3], 4294966272  ;;  %v1130_v0 = vld [vmem:[%s1692_s1 + $0x8] sm:$0xff]   ;;  %v1131_v1 = vld [vmem:[%s1692_s1] sm:$0xff]   ;;  %vm117_vm0 = vcmask 261120   ;;  %vm277_vm1 = vcmask 39936  }
   0xf   :  { %1099 = vmatprep.subr.bf16.mxu0 %v1130_v0  ;;  %1119 = vmatprep.subr.bf16.mxu1 %v1130_v0  ;;  %v1302_v2 = vld [vmem:[#allocation2] sm:$0xff]   ;;  %v1306_v4 = vld [vmem:[#allocation2 + $0x8] sm:$0xff]   ;;  %v1310_v6 = vld [vmem:[#allocation2 + $0x10] sm:$0xff]   ;;  %vm353_vm2 = vcmask 130112   ;;  %vm418_vm3 = vcmask 1041409   ;;  %vm420_vm4 = vcmask 1042434  }
  0x10   :  { %v1304_v3 = vld [vmem:[#allocation2 + $0x20] sm:$0xff]   ;;  %1100 = vmatpush3.bf16.msra.mxu0 %v1130_v0  ;;  %1121 = vmatpush3.bf16.msra.mxu1 %v1130_v0  ;;  %v1308_v5 = vld [vmem:[#allocation2 + $0x28] sm:$0xff]   ;;  %v1312_v7 = vld [vmem:[#allocation2 + $0x30] sm:$0xff]   ;;  %vm422_vm5 = vcmask 1043459   ;;  %vm424_vm6 = vcmask 1044484   ;;  %vm426_vm7 = vcmask 1045509  }
  0x11   :  { %1101 = vmatprep.subr.bf16.mxu0 %v1131_v1  ;;  %1120 = vmatprep.subr.bf16.mxu1 %v1131_v1  ;;  %v1324_v8 = vld [vmem:[#allocation2 + $0x18] sm:$0xff]   ;;  %v1337_v10 = vld [vmem:[%s1693_s2] ss:$0 sm:$0xff]  ;;  %vm428_vm8 = vcmask 1046534   ;;  %vm430_vm9 = vcmask 1047559   ;;  %vm433_vm10 = vcmask 130048  }
  0x12   :  { %1103 = vmatprep.mubr.msk.bf16.mxu0 %vm117_vm0, %v1302_v2  ;;  %1111 = vmatprep.mubr.msk.bf16.mxu1 %vm117_vm0, %v1304_v3  ;;  %v1328_v9 = vld [vmem:[#allocation2 + $0x38] sm:$0xff]   ;;  %v1352_v36 = vld [vmem:[%s1694_s3] ss:$0 sm:$0xff] }
  0x14   :  { %1102 = vmatpush3.bf16.msra.mxu0 %v1131_v1  ;;  %1122 = vmatpush3.bf16.msra.mxu1 %v1131_v1 }
  0x17   :  { %1104 = vmatmul.mubr.msk.bf16.vlgmr.msra.gmra.mxu0 %vm117_vm0, %v1306_v4  ;;  %1112 = vmatmul.mubr.msk.bf16.vlgmr.msra.gmra.mxu1 %vm117_vm0, %v1308_v5 }
  0x18   :  { %1107 = vmatprep.mubr.msk.bf16.mxu0 %vm117_vm0, %v1310_v6  ;;  %1115 = vmatprep.mubr.msk.bf16.mxu1 %vm117_vm0, %v1312_v7 }
  0x1f   :  { %1108 = vmatmul.mubr.msk.bf16.gmra.mxu0 %vm117_vm0, %v1324_v8  ;;  %1116 = vmatmul.mubr.msk.bf16.gmra.mxu1 %vm117_vm0, %v1328_v9 }
  0xd7   :  { %v1105_v11 = vpop.f32.mrf.mxu0  ;;  %v1113_v12 = vpop.f32.mrf.mxu1 }
  0xd8   :  { %v185_v13 = vadd.f32 %v1105_v11, %v1337_v10  ;;  %v217_v14 = vadd.f32 %v1113_v12, %v1337_v10 }
  0xd9   :  { %v176_v15 = vpop.f32.mrf.mxu0  ;;  %v208_v16 = vpop.f32.mrf.mxu1 }
  0xda   :  { %1148 = vtanh.f32 %v185_v13  ;;  %v177_v17 = vadd.f32 %v1337_v10, %v176_v15  ;;  %v209_v18 = vadd.f32 %v1337_v10, %v208_v16 }
  0xdb   :  { %1150 = vtanh.f32 %v217_v14  ;;  %v1106_v19 = vpop.f32.mrf.mxu0  ;;  %v1114_v20 = vpop.f32.mrf.mxu1 }
  0xdc   :  { %1152 = vtanh.f32 %v177_v17  ;;  %v188_v21 = vadd.f32 %v1106_v19, %v1337_v10  ;;  %v220_v22 = vadd.f32 %v1114_v20, %v1337_v10 }
  0xdd   :  { %1154 = vtanh.f32 %v209_v18  ;;  %v179_v23 = vpop.f32.mrf.mxu0  ;;  %v211_v24 = vpop.f32.mrf.mxu1 }
  0xde   :  { %1156 = vtanh.f32 %v188_v21  ;;  %v212_v25 = vadd.f32 %v1337_v10, %v211_v24  ;;  %v180_v26 = vadd.f32 %v1337_v10, %v179_v23 }
  0xdf   :  { %1158 = vtanh.f32 %v220_v22  ;;  %v1109_v27 = vpop.f32.mrf.mxu0  ;;  %v1117_v28 = vpop.f32.mrf.mxu1 }
  0xe0   :  { %1160 = vtanh.f32 %v212_v25  ;;  %v201_v31 = vadd.f32 %v1109_v27, %v1337_v10  ;;  %v233_v58 = vadd.f32 %v1117_v28, %v1337_v10 }
  0xe1   :  { %v192_v29 = vpop.f32.mrf.mxu0  ;;  %v224_v30 = vpop.f32.mrf.mxu1  ;;  %1162 = vtanh.f32 %v180_v26 }
  0xe2   :  { %v193_v39 = vadd.f32 %v1337_v10, %v192_v29  ;;  %v225_v49 = vadd.f32 %v1337_v10, %v224_v30 }
  0xe3   :  { %v1110_v32 = vpop.f32.mrf.mxu0  ;;  %v1118_v33 = vpop.f32.mrf.mxu1 }
  0xe4   :  { %v204_v34 = vadd.f32 %v1110_v32, %v1337_v10  ;;  %v236_v54 = vadd.f32 %v1118_v33, %v1337_v10 }
  0xe5   :  { %v195_v35 = vpop.f32.mrf.mxu0  ;;  %v227_v40 = vpop.f32.mrf.mxu1 }
  0xe6   :  { %1164 = vtanh.f32 %v204_v34  ;;  %v196_v37 = vadd.f32 %v1337_v10, %v195_v35  ;;  %v228_v46 = vadd.f32 %v1337_v10, %v227_v40  ;;  %v58_v40 = vld [vmem:[%s1695_s4] sm:$0xff]  ;;  %s1262_s4 = smov [#allocation5]  }
  0xe7   :  { %v1149_v38 = vpop.eup %1148  ;;  %1166 = vtanh.f32 %v201_v31  ;;  %s1060_s6 = sshll.u32 %s1262_s4, 4  ;;  %s1061_s6 = int_to_ptr.vmem [resolvable:$true] %s1060_s6 }
  0xe8   :  { %v1151_v41 = vpop.eup %1150  ;;  %v263_v42 = vmul.f32 %v1149_v38, %v1352_v36  ;;  %1168 = vtanh.f32 %v196_v37  ;;  %v342_v37 = vlaneseq  ;;  %s1234_s7 = scalar_lea.vmem %s1061_s6, 128  ;;  %p1239_p6 = scmp.lt.s32.totalorder %s1061_s6, %s1061_s6 }
  0xe9   :  { %v1153_v43 = vpop.eup %1152  ;;  %v271_v44 = vmul.f32 %v1151_v41, %v1352_v36  ;;  %1170 = vtanh.f32 %v193_v39  ;;  %p1235_p5 = scmp.ne.s32.totalorder %s1061_s6, %s1234_s7  ;;  %p1240_p7 = scmp.lt.s32.totalorder %s1234_s7, %s1234_s7 }
  0xea   :  { %v1155_v45 = vpop.eup %1154  ;;  %v284_v47 = vsel %vm277_vm1, %v263_v42, 0.0  ;;  %v261_v51 = vmul.f32 %v1153_v43, %v1352_v36  ;;  %1172 = vtanh.f32 %v228_v46  ;;  %v345_v38 = vshrl.u32 %v342_v37, 7 }
  0xeb   :  { %v1157_v48 = vpop.eup %1156  ;;  %v308_v50 = vsel %vm277_vm1, %v271_v44, 0.0  ;;  %285 = vadd.xlane.f32.xlu1 %v284_v47  ;;  %1174 = vtanh.f32 %v225_v49  ;;  %v269_v60 = vmul.f32 %v1155_v45, %v1352_v36  ;;  %p1241_p8 = por %p1240_p7, %p1239_p6 }
  0xec   :  { %v1159_v52 = vpop.eup %1158  ;;  %309 = vadd.xlane.f32.xlu0 %v308_v50  ;;  %v264_v53 = vmul.f32 %v1157_v48, %v1352_v36  ;;  %v278_v59 = vsel %vm277_vm1, %v261_v51, 0.0  ;;  %1176 = vtanh.f32 %v236_v54  ;;  %v1392_v39 = vsub.s32 0, %v345_v38 }
  0xed   :  { %v272_v56 = vmul.f32 %v1159_v52, %v1352_v36  ;;  %v1161_v57 = vpop.eup %1160  ;;  %1178 = vtanh.f32 %v233_v58  ;;  %v302_v1 = vsel %vm277_vm1, %v269_v60, 0.0  ;;  %v1398_v42 = vsub.s32 1, %v345_v38  ;;  %p1242_p9 = pnand %p1241_p8, %p1235_p5 }
  0xee   :  { %v287_v55 = vsel %vm277_vm1, %v264_v53, 0.0  ;;  %v1163_v61 = vpop.eup %1162  ;;  %v270_v63 = vmul.f32 %v1161_v57, %v1352_v36  ;;  %v530_v41 = vrot.slane %v58_v40, %v1392_v39  ;;  %v1401_v43 = vsub.s32 2, %v345_v38 }
  0xef   :  { %288 = vadd.xlane.f32.xlu1 %v287_v55  ;;  %v311_v62 = vsel %vm277_vm1, %v272_v56, 0.0  ;;  %v262_v10 = vmul.f32 %v1163_v61, %v1352_v36  ;;  %v1404_v45 = vsub.s32 3, %v345_v38  ;;  %v1407_v47 = vsub.s32 4, %v345_v38 }
  0xf0   :  { %279 = vadd.xlane.f32.xlu0 %v278_v59  ;;  %v305_v12 = vsel %vm277_vm1, %v270_v63, 0.0  ;;  %v552_v44 = vrot.slane %v58_v40, %v1401_v43  ;;  %v1410_v49 = vsub.s32 5, %v345_v38  ;;  %v1415_v51 = vsub.s32 6, %v345_v38 }
  0xf1   :  { %v281_v15 = vsel %vm277_vm1, %v262_v10, 0.0  ;;  %v563_v46 = vrot.slane %v58_v40, %v1404_v45  ;;  %v574_v48 = vrot.slane %v58_v40, %v1407_v47  ;;  %v1421_v53 = vsub.s32 7, %v345_v38 }
  0xf2   :  { %v1413_v50 = vrot.slane %v58_v40, %v1410_v49  ;;  %v1419_v52 = vrot.slane %v58_v40, %v1415_v51  ;;  %v343_v60 = vand.u32 127, %v342_v37 }
  0xf3   :  { %v1165_v0 = vpop.eup %1164  ;;  %312 = vadd.xlane.f32.xlu1 %v311_v62  ;;  %v1425_v54 = vrot.slane %v58_v40, %v1421_v53 }
  0xf4   :  { %v1167_v11 = vpop.eup %1166  ;;  %303 = vadd.xlane.f32.xlu0 %v302_v1  ;;  %v268_v13 = vmul.f32 %v1165_v0, %v1352_v36  ;;  %v348_v62 = vadd.s32 4294967288, %v343_v60  ;;  %v1446_v10 = vsub.s32 %v343_v60, %v345_v38 }
  0xf5   :  { %v1169_v14 = vpop.eup %1168  ;;  %v267_v16 = vmul.f32 %v1167_v11, %v1352_v36 }
  0xf6   :  { %v1171_v17 = vpop.eup %1170  ;;  %v299_v18 = vsel %vm277_vm1, %v268_v13, 0.0  ;;  %v266_v19 = vmul.f32 %v1169_v14, %v1352_v36  ;;  %v1444_v1 = vsub.s32 %v348_v62, %v345_v38 }
  0xf7   :  { %306 = vadd.xlane.f32.xlu1 %v305_v12  ;;  %v1173_v20 = vpop.eup %1172  ;;  %v296_v21 = vsel %vm277_vm1, %v267_v16, 0.0  ;;  %v265_v22 = vmul.f32 %v1171_v17, %v1352_v36 }
  0xf8   :  { %282 = vadd.xlane.f32.xlu0 %v281_v15  ;;  %v1175_v23 = vpop.eup %1174  ;;  %v293_v24 = vsel %vm277_vm1, %v266_v19, 0.0  ;;  %v274_v25 = vmul.f32 %v1173_v20, %v1352_v36 }
  0xf9   :  { %v1177_v26 = vpop.eup %1176  ;;  %v290_v27 = vsel %vm277_vm1, %v265_v22, 0.0  ;;  %v273_v28 = vmul.f32 %v1175_v23, %v1352_v36 }
  0xfa   :  { %v1179_v29 = vpop.eup %1178  ;;  %v317_v30 = vsel %vm277_vm1, %v274_v25, 0.0  ;;  %v276_v31 = vmul.f32 %v1177_v26, %v1352_v36 }
  0xfb   :  { %300 = vadd.xlane.f32.xlu1 %v299_v18  ;;  %v314_v32 = vsel %vm277_vm1, %v273_v28, 0.0  ;;  %v275_v33 = vmul.f32 %v1179_v29, %v1352_v36  ;;  %v541_v36 = vrot.slane %v58_v40, %v1398_v42 }
  0xfc   :  { %297 = vadd.xlane.f32.xlu0 %v296_v21  ;;  %v323_v34 = vsel %vm277_vm1, %v276_v31, 0.0 }
  0xfd   :  { %v320_v35 = vsel %vm277_vm1, %v275_v33, 0.0 }
  0xff   :  { %294 = vadd.xlane.f32.xlu1 %v293_v24 }
 0x100   :  { %291 = vadd.xlane.f32.xlu0 %v290_v27 }
 0x103   :  { %318 = vadd.xlane.f32.xlu1 %v317_v30 }
 0x104   :  { %315 = vadd.xlane.f32.xlu0 %v314_v32 }
 0x107   :  { %324 = vadd.xlane.f32.xlu1 %v323_v34 }
 0x108   :  { %321 = vadd.xlane.f32.xlu0 %v320_v35 }
 0x118   :  { %532 = vbcast.lane.b32.xlu1 %v530_v41, 256 }
 0x11c   :  { %543 = vbcast.lane.b32.xlu1 %v541_v36, 256 }
 0x11e   :  { %536 = vbcast.lane.b32.xlu0 %v530_v41, 264 }
 0x120   :  { %547 = vbcast.lane.b32.xlu1 %v541_v36, 264 }
 0x122   :  { %558 = vbcast.lane.b32.xlu0 %v552_v44, 264 }
 0x124   :  { %554 = vbcast.lane.b32.xlu1 %v552_v44, 256 }
 0x126   :  { %569 = vbcast.lane.b32.xlu0 %v563_v46, 264 }
 0x128   :  { %565 = vbcast.lane.b32.xlu1 %v563_v46, 256 }
 0x12a   :  { %580 = vbcast.lane.b32.xlu0 %v574_v48, 264 }
 0x12c   :  { %576 = vbcast.lane.b32.xlu1 %v574_v48, 256 }
 0x130   :  { %587 = vbcast.lane.b32.xlu1 %v1413_v50, 256 }
 0x134   :  { %598 = vbcast.lane.b32.xlu1 %v1419_v52, 256 }
 0x138   :  { %609 = vbcast.lane.b32.xlu1 %v1425_v54, 256 }
 0x174   :  { %v1428_v55 = vpop.xlane.xlu1 %285 }
 0x175   :  { %v1430_v56 = vpop.xlane.xlu0 %309  ;;  %v358_v16 = vrot.slane %v1428_v55, %v1446_v10 }
 0x176   :  { %v394_v35 = vrot.slane %v1430_v56, %v1446_v10 }
 0x178   :  { %v1432_v57 = vpop.xlane.xlu1 %288 }
 0x179   :  { %v1434_v58 = vpop.xlane.xlu0 %279  ;;  %v362_v14 = vrot.slane %v1432_v57, %v1444_v1 }
 0x17a   :  { %v347_v15 = vrot.slane %v1434_v58, %v1446_v10 }
 0x17b   :  { %v363_v25 = vsel %vm353_vm2, %v362_v14, %v358_v16 }
 0x17c   :  { %v1436_v59 = vpop.xlane.xlu1 %312 }
 0x17d   :  { %v1438_v61 = vpop.xlane.xlu0 %303  ;;  %v398_v26 = vrot.slane %v1436_v59, %v1444_v1 }
 0x17e   :  { %v385_v27 = vrot.slane %v1438_v61, %v1446_v10 }
 0x17f   :  { %v399_v36 = vsel %vm353_vm2, %v398_v26, %v394_v35 }
 0x180   :  { %v1440_v63 = vpop.xlane.xlu1 %306 }
 0x181   :  { %v1442_v0 = vpop.xlane.xlu0 %282  ;;  %v389_v23 = vrot.slane %v1440_v63, %v1444_v1 }
 0x182   :  { %v352_v12 = vrot.slane %v1442_v0, %v1444_v1 }
 0x183   :  { %v390_v37 = vsel %vm353_vm2, %v389_v23, %v385_v27 }
 0x184   :  { %v1448_v11 = vpop.xlane.xlu1 %300  ;;  %v354_v18 = vsel %vm353_vm2, %v352_v12, %v347_v15 }
 0x185   :  { %v1452_v13 = vpop.xlane.xlu0 %297  ;;  %v380_v19 = vrot.slane %v1448_v11, %v1444_v1  ;;  %v419_v28 = vsel %vm418_vm3, %v363_v25, %v354_v18 }
 0x186   :  { %v376_v20 = vrot.slane %v1452_v13, %v1446_v10 }
 0x188   :  { %v1460_v17 = vpop.xlane.xlu1 %294  ;;  %v381_v31 = vsel %vm353_vm2, %v380_v19, %v376_v20  ;;  %v1261_v19 = vmov 0  }
 0x189   :  { %v371_v21 = vrot.slane %v1460_v17, %v1444_v1  ;;  %v292_v22 = vpop.xlane.xlu0 %291  ;;  %1129 = vset.pattern.permute.xlu0 %v1261_v19  ;;  %1128 = vset.pattern.permute.xlu1 %v1261_v19 }
 0x18a   :  { %v367_v24 = vrot.slane %v292_v22, %v1446_v10 }
 0x18c   :  { %v372_v29 = vsel %vm353_vm2, %v371_v21, %v367_v24  ;;  %v1479_v30 = vpop.xlane.xlu1 %318 }
 0x18d   :  { %v421_v32 = vsel %vm420_vm4, %v372_v29, %v419_v28  ;;  %v407_v33 = vrot.slane %v1479_v30, %v1444_v1  ;;  %v1485_v34 = vpop.xlane.xlu0 %315 }
 0x18e   :  { %v403_v38 = vrot.slane %v1485_v34, %v1446_v10  ;;  %v423_v40 = vsel %vm422_vm5, %v381_v31, %v421_v32 }
 0x18f   :  { %v425_v41 = vsel %vm424_vm6, %v390_v37, %v423_v40 }
 0x190   :  { %v1495_v44 = vpop.xlane.xlu1 %324  ;;  %v408_v60 = vsel %vm353_vm2, %v407_v33, %v403_v38  ;;  %v427_v62 = vsel %vm426_vm7, %v399_v36, %v425_v41 }
 0x191   :  { %v416_v46 = vrot.slane %v1495_v44, %v1444_v1  ;;  %v1499_v48 = vpop.xlane.xlu0 %321  ;;  %v429_v15 = vsel %vm428_vm8, %v408_v60, %v427_v62 }
 0x192   :  { %v412_v12 = vrot.slane %v1499_v48, %v1446_v10 }
 0x194   :  { %v417_v14 = vsel %vm353_vm2, %v416_v46, %v412_v12  ;;  %v533_v26 = vpop.permute.xlu1 %532 }
 0x195   :  { %v431_v16 = vsel %vm430_vm9, %v417_v14, %v429_v15  ;;  %v537_v20 = vpop.permute.xlu0 %536 }
 0x196   :  { %v434_v18 = vsel %vm433_vm10, %v431_v16, -inf }
 0x197   :  { %435 = vmax.xlane.f32.xlu0 %v434_v18 }
 0x198   :  { %v544_v28 = vpop.permute.xlu1 %543 }
 0x199   :  { %v1512_v21 = vpop.permute.xlu0 %558 }
 0x19c   :  { %v548_v36 = vpop.permute.xlu1 %547 }
 0x19d   :  { %v1514_v23 = vpop.permute.xlu0 %569 }
 0x1a1   :  { %v1516_v24 = vpop.permute.xlu0 %580 }
 0x1ad   :  { %591 = vbcast.lane.b32.xlu0 %v1413_v50, 264 }
 0x1b1   :  { %602 = vbcast.lane.b32.xlu0 %v1419_v52, 264 }
 0x1b5   :  { %613 = vbcast.lane.b32.xlu0 %v1425_v54, 264 }
 0x220   :  { %v436_v25 = vpop.xlane.xlu0 %435 }
 0x221   :  { %v441_v27 = vrot.slane %v436_v25, %v1392_v39  ;;  %v449_v50 = vrot.slane %v436_v25, %v1401_v43  ;;  %v445_v52 = vrot.slane %v436_v25, %v1398_v42  ;;  %v453_v31 = vrot.slane %v436_v25, %v1404_v45 }
 0x222   :  { %v457_v40 = vrot.slane %v436_v25, %v1407_v47  ;;  %v465_v15 = vrot.slane %v436_v25, %v1415_v51  ;;  %v469_v19 = vrot.slane %v436_v25, %v1421_v53 }
 0x223   :  { %v479_v54 = vsub.f32 %v1442_v0, %v441_v27  ;;  %v478_v29 = vsub.f32 %v1434_v58, %v441_v27  ;;  %v482_v32 = vsub.f32 %v292_v22, %v449_v50  ;;  %v480_v33 = vsub.f32 %v1428_v55, %v445_v52 }
 0x224   :  { %v484_v38 = vsub.f32 %v1452_v13, %v453_v31  ;;  %v481_v60 = vsub.f32 %v1432_v57, %v445_v52  ;;  %v486_v58 = vsub.f32 %v1438_v61, %v457_v40  ;;  %v461_v22 = vrot.slane %v436_v25, %v1410_v49  ;;  %v555_v13 = vpop.permute.xlu1 %554 }
 0x225   :  { %v496_v35 = vmul.f32 1.442695, %v479_v54  ;;  %v494_v37 = vmul.f32 1.442695, %v478_v29  ;;  %v502_v41 = vmul.f32 1.442695, %v482_v32  ;;  %v483_v62 = vsub.f32 %v1460_v17, %v449_v50 }
 0x226   :  { %v498_v46 = vmul.f32 1.442695, %v480_v33  ;;  %v506_v0 = vmul.f32 1.442695, %v484_v38  ;;  %v500_v55 = vmul.f32 1.442695, %v481_v60  ;;  %v488_v14 = vsub.f32 %v1430_v56, %v461_v22 }
 0x227   :  { %1180 = vpow2.f32 %v496_v35  ;;  %v510_v12 = vmul.f32 1.442695, %v486_v58  ;;  %v504_v57 = vmul.f32 1.442695, %v483_v62  ;;  %v485_v16 = vsub.f32 %v1448_v11, %v453_v31 }
 0x228   :  { %1182 = vpow2.f32 %v494_v37  ;;  %v514_v61 = vmul.f32 1.442695, %v488_v14  ;;  %v490_v18 = vsub.f32 %v1485_v34, %v465_v15  ;;  %v566_v27 = vpop.permute.xlu1 %565  ;;  %v487_v50 = vsub.f32 %v1440_v63, %v457_v40 }
 0x229   :  { %1184 = vpow2.f32 %v502_v41  ;;  %v508_v17 = vmul.f32 1.442695, %v485_v16  ;;  %v492_v29 = vsub.f32 %v1499_v48, %v469_v19  ;;  %v489_v31 = vsub.f32 %v1436_v59, %v461_v22 }
 0x22a   :  { %1186 = vpow2.f32 %v498_v46  ;;  %v518_v56 = vmul.f32 1.442695, %v490_v18  ;;  %v512_v34 = vmul.f32 1.442695, %v487_v50  ;;  %v491_v38 = vsub.f32 %v1479_v30, %v465_v15 }
 0x22b   :  { %1188 = vpow2.f32 %v506_v0  ;;  %v522_v63 = vmul.f32 1.442695, %v492_v29  ;;  %v493_v0 = vsub.f32 %v1495_v44, %v469_v19 }
 0x22c   :  { %1190 = vpow2.f32 %v500_v55  ;;  %v577_v35 = vpop.permute.xlu1 %576  ;;  %v520_v60 = vmul.f32 1.442695, %v491_v38 }
 0x22d   :  { %1192 = vpow2.f32 %v510_v12  ;;  %v524_v55 = vmul.f32 1.442695, %v493_v0 }
 0x22e   :  { %1194 = vpow2.f32 %v504_v57  ;;  %v592_v57 = vpop.permute.xlu0 %591 }
 0x22f   :  { %1196 = vpow2.f32 %v514_v61 }
 0x230   :  { %1198 = vpow2.f32 %v508_v17  ;;  %v588_v46 = vpop.permute.xlu1 %587 }
 0x231   :  { %1200 = vpow2.f32 %v518_v56 }
 0x232   :  { %1202 = vpow2.f32 %v512_v34 }
 0x233   :  { %1204 = vpow2.f32 %v522_v63 }
 0x234   :  { %v1181_v52 = vpop.eup %1180  ;;  %v599_v12 = vpop.permute.xlu1 %598 }
 0x235   :  { %v1183_v54 = vpop.eup %1182  ;;  %v1538_v32 = vmul.f32 %v1181_v52, %v537_v20  ;;  %v516_v20 = vmul.f32 1.442695, %v489_v31 }
 0x236   :  { %v1185_v11 = vpop.eup %1184  ;;  %v1541_v33 = vmul.f32 %v1183_v54, %v533_v26 }
 0x237   :  { %v1187_v25 = vpop.eup %1186  ;;  %667 = vperm.xlu0 %1129, %v1538_v32   ;;  %v1545_v37 = vmul.f32 %v1185_v11, %v555_v13  ;;  %1206 = vpow2.f32 %v516_v20 }
 0x238   :  { %664 = vperm.xlu1 %1128, %v1541_v33   ;;  %v1189_v48 = vpop.eup %1188  ;;  %v1548_v40 = vmul.f32 %v1187_v25, %v544_v28  ;;  %1208 = vpow2.f32 %v520_v60  ;;  %v610_v61 = vpop.permute.xlu1 %609 }
 0x239   :  { %v1191_v59 = vpop.eup %1190  ;;  %v1552_v26 = vmul.f32 %v1189_v48, %v566_v27  ;;  %1210 = vpow2.f32 %v524_v55 }
 0x23a   :  { %v1193_v41 = vpop.eup %1192  ;;  %v1555_v58 = vmul.f32 %v1191_v59, %v548_v36 }
 0x23b   :  { %676 = vperm.xlu0 %1129, %v1545_v37   ;;  %v1195_v30 = vpop.eup %1194  ;;  %v1559_v28 = vmul.f32 %v1193_v41, %v577_v35 }
 0x23c   :  { %670 = vperm.xlu1 %1128, %v1548_v40   ;;  %v1197_v22 = vpop.eup %1196  ;;  %v1562_v62 = vmul.f32 %v1195_v30, %v1512_v21 }
 0x23d   :  { %v1199_v13 = vpop.eup %1198  ;;  %v1566_v44 = vmul.f32 %v1197_v22, %v588_v46 }
 0x23e   :  { %v1201_v36 = vpop.eup %1200  ;;  %v1569_v14 = vmul.f32 %v1199_v13, %v1514_v23  ;;  %v603_v23 = vpop.permute.xlu0 %602 }
 0x23f   :  { %682 = vperm.xlu0 %1129, %v1552_v26   ;;  %v1203_v15 = vpop.eup %1202  ;;  %v1573_v21 = vmul.f32 %v1201_v36, %v599_v12 }
 0x240   :  { %673 = vperm.xlu1 %1128, %v1555_v58   ;;  %v1205_v16 = vpop.eup %1204  ;;  %v1576_v18 = vmul.f32 %v1203_v15, %v1516_v24 }
 0x241   :  { %v1580_v27 = vmul.f32 %v1205_v16, %v610_v61 }
 0x242   :  { %v614_v24 = vpop.permute.xlu0 %613 }
 0x243   :  { %688 = vperm.xlu0 %1129, %v1559_v28  }
 0x244   :  { %679 = vperm.xlu1 %1128, %v1562_v62   ;;  %v1207_v19 = vpop.eup %1206 }
 0x245   :  { %v1582_v17 = vmul.f32 %v1207_v19, %v592_v57  ;;  %v1209_v50 = vpop.eup %1208 }
 0x246   :  { %v1586_v52 = vmul.f32 %v1209_v50, %v603_v23  ;;  %v1211_v54 = vpop.eup %1210 }
 0x247   :  { %694 = vperm.xlu0 %1129, %v1566_v44   ;;  %v1589_v56 = vmul.f32 %v1211_v54, %v614_v24 }
 0x248   :  { %685 = vperm.xlu1 %1128, %v1569_v14  }
 0x24b   :  { %700 = vperm.xlu0 %1129, %v1573_v21  }
 0x24c   :  { %691 = vperm.xlu1 %1128, %v1576_v18  }
 0x24f   :  { %706 = vperm.xlu0 %1129, %v1580_v27  }
 0x250   :  { %697 = vperm.xlu1 %1128, %v1582_v17  }
 0x254   :  { %703 = vperm.xlu1 %1128, %v1586_v52  }
 0x258   :  { %709 = vperm.xlu1 %1128, %v1589_v56  }
 0x2b2   :  { %v668_v29 = vpop.permute.xlu0 %667 }
 0x2b3   :  { %v665_v11 = vpop.permute.xlu1 %664  ;;  %v718_v22 = vrot.slane %v668_v29, %v1444_v1 }
 0x2b4   :  { %v714_v30 = vrot.slane %v665_v11, %v1446_v10 }
 0x2b6   :  { %v677_v31 = vpop.permute.xlu0 %676  ;;  %v719_v50 = vsel %vm353_vm2, %v718_v22, %v714_v30 }
 0x2b7   :  { %v671_v34 = vpop.permute.xlu1 %670  ;;  %v732_v12 = vrot.slane %v677_v31, %v1446_v10 }
 0x2b8   :  { %v723_v55 = vrot.slane %v671_v34, %v1446_v10 }
 0x2ba   :  { %v683_v25 = vpop.permute.xlu0 %682 }
 0x2bb   :  { %v674_v35 = vpop.permute.xlu1 %673  ;;  %v741_v57 = vrot.slane %v683_v25, %v1446_v10 }
 0x2bc   :  { %v727_v41 = vrot.slane %v674_v35, %v1444_v1 }
 0x2be   :  { %v689_v48 = vpop.permute.xlu0 %688  ;;  %v728_v15 = vsel %vm353_vm2, %v727_v41, %v723_v55 }
 0x2bf   :  { %v680_v63 = vpop.permute.xlu1 %679  ;;  %v750_v19 = vrot.slane %v689_v48, %v1446_v10  ;;  %v783_v11 = vsel %vm418_vm3, %v728_v15, %v719_v50 }
 0x2c0   :  { %v736_v46 = vrot.slane %v680_v63, %v1444_v1 }
 0x2c2   :  { %v695_v38 = vpop.permute.xlu0 %694  ;;  %v737_v61 = vsel %vm353_vm2, %v736_v46, %v732_v12 }
 0x2c3   :  { %v686_v20 = vpop.permute.xlu1 %685  ;;  %v759_v24 = vrot.slane %v695_v38, %v1446_v10  ;;  %v784_v35 = vsel %vm420_vm4, %v737_v61, %v783_v11  ;;  %v855_v11 = vunpack.c.l.bf16 %v1306_v4 }
 0x2c4   :  { %v745_v13 = vrot.slane %v686_v20, %v1444_v1 }
 0x2c6   :  { %v701_v60 = vpop.permute.xlu0 %700  ;;  %v746_v54 = vsel %vm353_vm2, %v745_v13, %v741_v57 }
 0x2c7   :  { %v692_v59 = vpop.permute.xlu1 %691  ;;  %v768_v34 = vrot.slane %v701_v60, %v1446_v10  ;;  %v785_v48 = vsel %vm422_vm5, %v746_v54, %v784_v35 }
 0x2c8   :  { %v754_v36 = vrot.slane %v692_v59, %v1444_v1 }
 0x2ca   :  { %v755_v31 = vsel %vm353_vm2, %v754_v36, %v750_v19  ;;  %v707_v25 = vpop.permute.xlu0 %706 }
 0x2cb   :  { %v698_v0 = vpop.permute.xlu1 %697  ;;  %v786_v38 = vsel %vm424_vm6, %v755_v31, %v785_v48  ;;  %v777_v41 = vrot.slane %v707_v25, %v1446_v10  ;;  %v853_v25 = vunpack.c.l.bf16 %v1302_v2 }
 0x2cc   :  { %v763_v16 = vrot.slane %v698_v0, %v1444_v1 }
 0x2ce   :  { %v764_v63 = vsel %vm353_vm2, %v763_v16, %v759_v24 }
 0x2cf   :  { %v704_v23 = vpop.permute.xlu1 %703  ;;  %v787_v0 = vsel %vm426_vm7, %v764_v63, %v786_v38  ;;  %v862_v63 = vunpack.c.h.bf16 %v1304_v3 }
 0x2d0   :  { %v772_v29 = vrot.slane %v704_v23, %v1444_v1 }
 0x2d2   :  { %v773_v20 = vsel %vm353_vm2, %v772_v29, %v768_v34  ;;  %v860_v34 = vunpack.c.h.bf16 %v1324_v8 }
 0x2d3   :  { %v710_v59 = vpop.permute.xlu1 %709  ;;  %v788_v30 = vsel %vm428_vm8, %v773_v20, %v787_v0 }
 0x2d4   :  { %v781_v46 = vrot.slane %v710_v59, %v1444_v1  ;;  %v861_v59 = vunpack.c.l.bf16 %v1304_v3  ;;  %v863_v3 = vunpack.c.l.bf16 %v1308_v5 }
 0x2d6   :  { %v782_v60 = vsel %vm353_vm2, %v781_v46, %v777_v41 }
 0x2d7   :  { %v789_v22 = vsel %vm430_vm9, %v782_v60, %v788_v30 }
 0x2d8   :  { %v791_v55 = vsel %vm433_vm10, %v789_v22, 0.0 }
 0x2d9   :  { %792 = vadd.xlane.f32.xlu0 %v791_v55 }
 0x362   :  { %v793_v13 = vpop.xlane.xlu0 %792 }
 0x363   :  { %v794_v12 = vadd.f32 1e-08, %v793_v13 }
 0x365   :  { %1212 = vrcp.f32 %v794_v12 }
 0x372   :  { %v1213_v36 = vpop.eup %1212 }
 0x373   :  { %v812_v15 = vrot.slane %v1213_v36, %v1404_v45  ;;  %v800_v10 = vrot.slane %v1213_v36, %v1392_v39  ;;  %v828_v16 = vrot.slane %v1213_v36, %v1421_v53  ;;  %v804_v23 = vrot.slane %v1213_v36, %v1398_v42 }
 0x374   :  { %v816_v42 = vrot.slane %v1213_v36, %v1407_v47 }
 0x375   :  { %v844_v1 = vmul.f32 %v812_v15, %v1569_v14  ;;  %v837_v57 = vmul.f32 %v800_v10, %v1541_v33  ;;  %v851_v61 = vmul.f32 %v828_v16, %v1580_v27  ;;  %v838_v19 = vmul.f32 %v800_v10, %v1538_v32 }
 0x376   :  { %v839_v45 = vmul.f32 %v804_v23, %v1548_v40  ;;  %v840_v39 = vmul.f32 %v804_v23, %v1555_v58  ;;  %v808_v14 = vrot.slane %v1213_v36, %v1401_v43  ;;  %v843_v32 = vmul.f32 %v812_v15, %v1552_v26 }
 0x377   :  { %906 = vperm.xlu0 %1129, %v844_v1   ;;  %871 = vperm.xlu1 %1128, %v837_v57   ;;  %v845_v27 = vmul.f32 %v816_v42, %v1559_v28  ;;  %v846_v40 = vmul.f32 %v816_v42, %v1576_v18  ;;  %v820_v58 = vrot.slane %v1213_v36, %v1410_v49 }
 0x378   :  { %v841_v53 = vmul.f32 %v808_v14, %v1545_v37  ;;  %v842_v33 = vmul.f32 %v808_v14, %v1562_v62  ;;  %v824_v62 = vrot.slane %v1213_v36, %v1415_v51  ;;  %v852_v28 = vmul.f32 %v828_v16, %v1589_v56 }
 0x379   :  { %v847_v43 = vmul.f32 %v820_v58, %v1566_v44  ;;  %v848_v37 = vmul.f32 %v820_v58, %v1582_v17  ;;  %v856_v17 = vunpack.c.h.bf16 %v1306_v4  ;;  %v858_v51 = vunpack.c.h.bf16 %v1310_v6 }
 0x37a   :  { %v849_v26 = vmul.f32 %v824_v62, %v1573_v21  ;;  %v850_v47 = vmul.f32 %v824_v62, %v1586_v52  ;;  %v854_v21 = vunpack.c.h.bf16 %v1302_v2  ;;  %v859_v52 = vunpack.c.l.bf16 %v1324_v8 }
 0x37b   :  { %941 = vperm.xlu0 %1129, %v851_v61   ;;  %876 = vperm.xlu1 %1128, %v838_v19   ;;  %v857_v56 = vunpack.c.l.bf16 %v1310_v6  ;;  %v864_v19 = vunpack.c.h.bf16 %v1308_v5 }
 0x37f   :  { %881 = vperm.xlu1 %1128, %v839_v45  }
 0x383   :  { %886 = vperm.xlu1 %1128, %v840_v39  }
 0x387   :  { %891 = vperm.xlu1 %1128, %v841_v53  }
 0x38b   :  { %896 = vperm.xlu1 %1128, %v842_v33  }
 0x38f   :  { %901 = vperm.xlu1 %1128, %v843_v32  }
 0x393   :  { %911 = vperm.xlu1 %1128, %v845_v27  }
 0x397   :  { %916 = vperm.xlu1 %1128, %v846_v40  }
 0x39b   :  { %921 = vperm.xlu1 %1128, %v847_v43  }
 0x39f   :  { %926 = vperm.xlu1 %1128, %v848_v37  }
 0x3a3   :  { %931 = vperm.xlu1 %1128, %v849_v26   ;;  %v865_v26 = vunpack.c.l.bf16 %v1312_v7 }
 0x3a7   :  { %936 = vperm.xlu1 %1128, %v850_v47  }
 0x3ab   :  { %946 = vperm.xlu1 %1128, %v852_v28  }
 0x3f2   :  { %v872_v18 = vpop.permute.xlu1 %871  ;;  %v907_v48 = vpop.permute.xlu0 %906 }
 0x3f3   :  { %v956_v60 = vmul.f32 %v907_v48, %v860_v34  ;;  %v949_v30 = vmul.f32 %v872_v18, %v853_v25  ;;  %v868_v34 = vunpack.c.h.bf16 %v1328_v9 }
 0x3f5   :  { %v993_v57 = vsel %vm117_vm0, %v956_v60, 0.0  ;;  %v965_v16 = vsel %vm117_vm0, %v949_v30, 0.0 }
 0x3f6   :  { %v877_v49 = vpop.permute.xlu1 %876 }
 0x3f7   :  { %v950_v38 = vmul.f32 %v877_v49, %v854_v21  ;;  %v866_v49 = vunpack.c.h.bf16 %v1312_v7 }
 0x3f9   :  { %v966_v55 = vsel %vm117_vm0, %v950_v38, 0.0 }
 0x3fa   :  { %v882_v50 = vpop.permute.xlu1 %881  ;;  %v967_v23 = vadd.f32 %v966_v55, %v965_v16 }
 0x3fb   :  { %v951_v41 = vmul.f32 %v882_v50, %v855_v11 }
 0x3fc   :  { %v968_v40 = vrot.slane %v967_v23, 4 }
 0x3fd   :  { %v974_v13 = vsel %vm117_vm0, %v951_v41, 0.0 }
 0x3fe   :  { %v887_v54 = vpop.permute.xlu1 %886  ;;  %v969_v50 = vadd.f32 %v968_v40, %v967_v23 }
 0x3ff   :  { %v952_v35 = vmul.f32 %v887_v54, %v856_v17 }
 0x400   :  { %v970_v25 = vrot.slane %v969_v50, 2 }
 0x401   :  { %v975_v6 = vsel %vm117_vm0, %v952_v35, 0.0 }
 0x402   :  { %v892_v44 = vpop.permute.xlu1 %891  ;;  %v976_v36 = vadd.f32 %v975_v6, %v974_v13  ;;  %v971_v60 = vadd.f32 %v970_v25, %v969_v50 }
 0x403   :  { %v953_v4 = vmul.f32 %v892_v44, %v857_v56 }
 0x404   :  { %v977_v33 = vrot.slane %v976_v36, 4 }
 0x405   :  { %v983_v15 = vsel %vm117_vm0, %v953_v4, 0.0 }
 0x406   :  { %v897_v24 = vpop.permute.xlu1 %896  ;;  %v978_v5 = vadd.f32 %v977_v33, %v976_v36  ;;  %v972_v36 = vrot.slane %v971_v60, 1 }
 0x407   :  { %v954_v20 = vmul.f32 %v897_v24, %v858_v51  ;;  %v867_v24 = vunpack.c.l.bf16 %v1328_v9  ;;  %v942_v51 = vpop.permute.xlu0 %941 }
 0x408   :  { %v979_v21 = vrot.slane %v978_v5, 2 }
 0x409   :  { %v984_v8 = vsel %vm117_vm0, %v954_v20, 0.0 }
 0x40a   :  { %v902_v29 = vpop.permute.xlu1 %901  ;;  %v985_v61 = vadd.f32 %v984_v8, %v983_v15 }
 0x40b   :  { %v955_v46 = vmul.f32 %v902_v29, %v859_v52 }
 0x40c   :  { %v986_v42 = vrot.slane %v985_v61, 4 }
 0x40d   :  { %v992_v12 = vsel %vm117_vm0, %v955_v46, 0.0 }
 0x40e   :  { %v912_v31 = vpop.permute.xlu1 %911  ;;  %v994_v45 = vadd.f32 %v993_v57, %v992_v12  ;;  %v987_v18 = vadd.f32 %v986_v42, %v985_v61 }
 0x40f   :  { %v957_v2 = vmul.f32 %v912_v31, %v861_v59  ;;  %v980_v59 = vadd.f32 %v979_v21, %v978_v5 }
 0x410   :  { %v995_v58 = vrot.slane %v994_v45, 4  ;;  %v988_v56 = vrot.slane %v987_v18, 2 }
 0x411   :  { %v1001_v39 = vsel %vm117_vm0, %v957_v2, 0.0  ;;  %v981_v2 = vrot.slane %v980_v59, 1 }
 0x412   :  { %v917_v0 = vpop.permute.xlu1 %916  ;;  %v996_v54 = vadd.f32 %v995_v58, %v994_v45  ;;  %v989_v4 = vadd.f32 %v988_v56, %v987_v18 }
 0x413   :  { %v958_v22 = vmul.f32 %v917_v0, %v862_v63  ;;  %v963_v63 = vmul.f32 %v942_v51, %v867_v24  ;;  %v982_v16 = vadd.f32 %v981_v2, %v980_v59 }
 0x414   :  { %v997_v35 = vrot.slane %v996_v54, 2 }
 0x415   :  { %v1002_v10 = vsel %vm117_vm0, %v958_v22, 0.0  ;;  %v1028_v22 = vsel %vm117_vm0, %v963_v63, 0.0 }
 0x416   :  { %v922_v1 = vpop.permute.xlu1 %921  ;;  %v1003_v14 = vadd.f32 %v1002_v10, %v1001_v39  ;;  %v998_v30 = vadd.f32 %v997_v35, %v996_v54  ;;  %v973_v39 = vadd.f32 %v972_v36, %v971_v60 }
 0x417   :  { %v959_v53 = vmul.f32 %v922_v1, %v863_v3  ;;  %v990_v3 = vrot.slane %v989_v4, 1 }
 0x418   :  { %v1004_v43 = vrot.slane %v1003_v14, 4  ;;  %v999_v15 = vrot.slane %v998_v30, 1  ;;  %v1045_v42 = vsel %vm418_vm3, %v982_v16, %v973_v39 }
 0x419   :  { %v1010_v37 = vsel %vm117_vm0, %v959_v53, 0.0  ;;  %v991_v45 = vadd.f32 %v990_v3, %v989_v4 }
 0x41a   :  { %v927_v32 = vpop.permute.xlu1 %926  ;;  %v1005_v29 = vadd.f32 %v1004_v43, %v1003_v14  ;;  %v1000_v14 = vadd.f32 %v999_v15, %v998_v30 }
 0x41b   :  { %v960_v27 = vmul.f32 %v927_v32, %v864_v19  ;;  %v1046_v58 = vsel %vm420_vm4, %v991_v45, %v1045_v42 }
 0x41c   :  { %v1006_v48 = vrot.slane %v1005_v29, 2 }
 0x41d   :  { %v1011_v62 = vsel %vm117_vm0, %v960_v27, 0.0 }
 0x41e   :  { %v1012_v47 = vadd.f32 %v1011_v62, %v1010_v37  ;;  %v932_v28 = vpop.permute.xlu1 %931  ;;  %v1007_v9 = vadd.f32 %v1006_v48, %v1005_v29  ;;  %v1047_v62 = vsel %vm422_vm5, %v1000_v14, %v1046_v58 }
 0x41f   :  { %v961_v17 = vmul.f32 %v932_v28, %v865_v26 }
 0x420   :  { %v1013_v44 = vrot.slane %v1012_v47, 4  ;;  %v1008_v57 = vrot.slane %v1007_v9, 1 }
 0x421   :  { %v1019_v7 = vsel %vm117_vm0, %v961_v17, 0.0 }
 0x422   :  { %v1014_v11 = vadd.f32 %v1013_v44, %v1012_v47  ;;  %v937_v52 = vpop.permute.xlu1 %936  ;;  %v1009_v32 = vadd.f32 %v1008_v57, %v1007_v9 }
 0x423   :  { %v962_v31 = vmul.f32 %v937_v52, %v866_v49 }
 0x424   :  { %v1015_v38 = vrot.slane %v1014_v11, 2  ;;  %v1048_v26 = vsel %vm424_vm6, %v1009_v32, %v1047_v62 }
 0x425   :  { %v1020_v20 = vsel %vm117_vm0, %v962_v31, 0.0 }
 0x426   :  { %v1021_v41 = vadd.f32 %v1020_v20, %v1019_v7  ;;  %v947_v46 = vpop.permute.xlu1 %946  ;;  %v1016_v55 = vadd.f32 %v1015_v38, %v1014_v11 }
 0x427   :  { %v964_v0 = vmul.f32 %v947_v46, %v868_v34 }
 0x428   :  { %v1022_v6 = vrot.slane %v1021_v41, 4  ;;  %v1017_v61 = vrot.slane %v1016_v55, 1 }
 0x429   :  { %v1029_v8 = vsel %vm117_vm0, %v964_v0, 0.0 }
 0x42a   :  { %v1023_v13 = vadd.f32 %v1022_v6, %v1021_v41  ;;  %v1030_v12 = vadd.f32 %v1029_v8, %v1028_v22  ;;  %v1018_v27 = vadd.f32 %v1017_v61, %v1016_v55 }
 0x42c   :  { %v1024_v10 = vrot.slane %v1023_v13, 2  ;;  %v1031_v1 = vrot.slane %v1030_v12, 4  ;;  %v1049_v47 = vsel %vm426_vm7, %v1018_v27, %v1048_v26 }
 0x42e   :  { %v1025_v19 = vadd.f32 %v1024_v10, %v1023_v13  ;;  %v1032_v23 = vadd.f32 %v1031_v1, %v1030_v12 }
 0x430   :  { %v1026_v53 = vrot.slane %v1025_v19, 1  ;;  %v1033_v33 = vrot.slane %v1032_v23, 2 }
 0x432   :  { %v1034_v40 = vadd.f32 %v1033_v33, %v1032_v23  ;;  %v1027_v43 = vadd.f32 %v1026_v53, %v1025_v19 }
 0x434   :  { %v1035_v37 = vrot.slane %v1034_v40, 1  ;;  %v1050_v28 = vsel %vm428_vm8, %v1027_v43, %v1049_v47 }
 0x436   :  { %v1036_v5 = vadd.f32 %v1035_v37, %v1034_v40 }
 0x438   :  { %v1051_v18 = vsel %vm430_vm9, %v1036_v5, %v1050_v28 }
 0x439   :  { %1053 = vst.msk [vmem:[#allocation5] sm:$0xff] %vm117_vm0, %v1051_v18 }
 0x43a   :  { %1245 = shalt.err (!%p1242_p9)
}
 0x43b   :  { %1063 = dma.vmem_to_hbm [thread:$0]  %s1061_s6, 128, %s1696_s5, [#allocation4]  }
 0x43c   :  { %1256 = dma.done.wait [#allocation4], 128  }
 0x43d   :  { %1257 = vsyncadd [#allocation4], 4294967168 }
 0x43e   :  { %1067 = vsyncpa [#allocation3], 1 }
 0x43f   :  { %1068 = vsyncpa [#allocation4], 1 }

</bundles_post_ra>
